<compile_context>
chip_gen: v6e
topology: v6e:2x2x1
jax: 0.10.0
libtpu: 0.0.40
codegen_flags: <defaults>
</compile_context>

<pallas_src>
import functools

import jax
import jax.numpy as jnp
from jax.experimental import pallas as pl
from jax.experimental.pallas import tpu as pltpu


# ----------------------------- in-kernel helpers -----------------------------

def _shift_down(v):
    """out[h] = v[h-1], out[0] = 0  (rows move down; top row zero-padded)."""
    zero = jnp.zeros_like(v[:1])
    return jnp.concatenate([zero, v[:-1]], axis=0)


def _shift_up(v):
    """out[h] = v[h+1], out[H-1] = 0 (rows move up; bottom row zero-padded)."""
    zero = jnp.zeros_like(v[:1])
    return jnp.concatenate([v[1:], zero], axis=0)


def _block_kernel(*refs, H, W, Cin, Cout, has_projection):
    if has_projection:
        x_ref, w1_ref, b1_ref, w2_ref, b2_ref, bs_ref, o_ref = refs
    else:
        x_ref, w1_ref, b1_ref, w2_ref, b2_ref, o_ref = refs
        bs_ref = None

    WCo = W * Cout
    xb = x_ref[0]                                   # (H, W*Cin) bf16, lane-dense

    # ---- conv1 (3x3, SAME) + fused 1x1 projection: ONE wide matmul -------------
    # Columns of w1_ref: [M1_top | M1_center (| M_proj)] | M1_bottom is re-ordered as
    # [top, center, bottom, proj]; the W-dim conv + edge clipping live in the banded
    # weight matrices, the H-dim conv is done by shifting the f32 result rows.
    r1 = jnp.dot(xb, w1_ref[...], preferred_element_type=jnp.float32)
    acc = (_shift_down(r1[:, 0:WCo])                # top tap reads input row h-1
           + r1[:, WCo:2 * WCo]                     # center tap
           + _shift_up(r1[:, 2 * WCo:3 * WCo]))     # bottom tap reads input row h+1
    mid = jnp.maximum(acc + b1_ref[...], 0.0)       # folded-BN bias + ReLU, f32
    mid_b = mid.astype(jnp.bfloat16)                # single cast on (H, W*Cout)

    # ---- conv2 (3x3, SAME): ONE wide matmul ------------------------------------
    r2 = jnp.dot(mid_b, w2_ref[...], preferred_element_type=jnp.float32)
    out = (_shift_down(r2[:, 0:WCo])
           + r2[:, WCo:2 * WCo]
           + _shift_up(r2[:, 2 * WCo:3 * WCo])
           + b2_ref[...])

    # ---- shortcut ---------------------------------------------------------------
    if has_projection:
        sc = r1[:, 3 * WCo:4 * WCo] + bs_ref[...]   # came along for free in matmul 1
    else:
        sc = xb.astype(jnp.float32)                 # identity (requires Cin == Cout)

    # ---- residual add + ReLU, lane-dense (H, W*Cout) full-width store -----------
    o_ref[0] = jnp.maximum(out + sc, 0.0)


# ----------------------------- wrapper-side prep -----------------------------

def _fold_bn(w, bn, eps=1e-5):
    """Fold inference-mode BN into the preceding conv: scale -> weight, bias stays f32."""
    gamma, beta, mean, var = bn
    scale = gamma / jnp.sqrt(var + eps)
    return w * scale, (beta - mean * scale).astype(jnp.float32)


def _banded_conv3x3(w_hwio, W):
    """(3,3,Cin,Cout) -> 3 block-banded (W*Cin, W*Cout) matrices (one per kh).

    M_kh[w_in*Cin + c, w_out*Cout + co] = w[kh, w_in - w_out + 1, c, co] when the kw
    tap is in range, else 0 — i.e. the conv along W (with SAME edge clipping) is
    expressed as a dense matmul over lane-dense rows.
    """
    _, _, Cin, Cout = w_hwio.shape
    kw = jnp.arange(3)
    win = jnp.arange(W)
    wout = jnp.arange(W)
    # ind[k, a, b] = 1 iff input col a == output col b + k - 1
    ind = (win[None, :, None] == (wout[None, None, :] + kw[:, None, None] - 1))
    ind = ind.astype(w_hwio.dtype)
    mats = []
    for kh in range(3):
        m = jnp.einsum("kab,kio->aibo", ind, w_hwio[kh])     # (W, Cin, W, Cout)
        mats.append(m.reshape(W * Cin, W * Cout))
    return mats


def _banded_proj(ws, W):
    """(Cin, Cout) 1x1 projection -> block-diagonal (W*Cin, W*Cout) matrix."""
    Cin, Cout = ws.shape
    m = jnp.einsum("ab,io->aibo", jnp.eye(W, dtype=ws.dtype), ws)
    return m.reshape(W * Cin, W * Cout)


def block_forward(x, w1, bn1, w2, bn2, ws=None, bn_s=None, eps=1e-5):
    """Fused ResNet BasicBlock forward (stride=1), NHWC.

    x  : (N, H, W, Cin) f32
    w1 : (3, 3, Cin, Cout) HWIO conv1 weight;  bn1 = (gamma, beta, mean, var)
    w2 : (3, 3, Cout, Cout) HWIO conv2 weight; bn2 = (gamma, beta, mean, var)
    ws : (Cin, Cout) 1x1 projection weight or None (identity shortcut, Cin == Cout)
    """
    N, H, W, Cin = x.shape
    Cout = w1.shape[-1]
    has_projection = ws is not None
    assert has_projection or Cin == Cout, "identity shortcut needs Cin == Cout"
    WCo = W * Cout

    # Fold BN, build banded weights (one-time wrapper cost), quantize to bf16.
    w1f, b1 = _fold_bn(w1, bn1, eps)
    w2f, b2 = _fold_bn(w2, bn2, eps)
    m1 = _banded_conv3x3(w1f, W)                       # 3 x (W*Cin, W*Cout)
    m2 = _banded_conv3x3(w2f, W)                       # 3 x (W*Cout, W*Cout)
    w1_cols = [m1[0], m1[1], m1[2]]
    if has_projection:
        wsf, bs = _fold_bn(ws, bn_s, eps)
        w1_cols.append(_banded_proj(wsf, W))           # fuse 1x1 proj into matmul 1
        bs_row = jnp.tile(bs, W).reshape(1, WCo)
    w1_all = jnp.concatenate(w1_cols, axis=1).astype(jnp.bfloat16)
    w2_all = jnp.concatenate(m2, axis=1).astype(jnp.bfloat16)
    b1_row = jnp.tile(b1, W).reshape(1, WCo)
    b2_row = jnp.tile(b2, W).reshape(1, WCo)

    # Lane-dense, bf16 input (free contiguous reshape + one fused cast in HBM).
    xb = x.astype(jnp.bfloat16).reshape(N, H, W * Cin)

    n_w1_cols = (4 if has_projection else 3) * WCo

    args = [xb, w1_all, b1_row, w2_all, b2_row]
    in_specs = [
        pl.BlockSpec((1, H, W * Cin), lambda n: (n, 0, 0)),         # per-sample tile
        pl.BlockSpec((W * Cin, n_w1_cols), lambda n: (0, 0)),        # resident weights
        pl.BlockSpec((1, WCo), lambda n: (0, 0)),
        pl.BlockSpec((WCo, 3 * WCo), lambda n: (0, 0)),
        pl.BlockSpec((1, WCo), lambda n: (0, 0)),
    ]
    if has_projection:
        args.append(bs_row)
        in_specs.append(pl.BlockSpec((1, WCo), lambda n: (0, 0)))

    kernel = functools.partial(_block_kernel, H=H, W=W, Cin=Cin, Cout=Cout,
                               has_projection=has_projection)

    out = pl.pallas_call(
        kernel,
        out_shape=jax.ShapeDtypeStruct((N, H, WCo), jnp.float32),
        grid_spec=pltpu.PrefetchScalarGridSpec(
            num_scalar_prefetch=0,
            grid=(N,),                               # N multiple of 2 -> both v7x TCs busy
            in_specs=in_specs,
            # Lane-dense output (last dim = W*Cout = 128 here) -> unmasked vst.
            out_specs=pl.BlockSpec((1, H, WCo), lambda n: (n, 0, 0)),
        ),
        compiler_params=pltpu.CompilerParams(
            dimension_semantics=("parallel",)),
    )(*args)
    return out.reshape(N, H, W, Cout)                 # free contiguous reshape


# ----------------------------- pure-JAX reference -----------------------------

def _ref_forward(x, w1, bn1, w2, bn2, ws=None, bn_s=None, eps=1e-5):
    """Reference with the same quantization points (bf16 matmul inputs, f32 acc)."""
    dn = ("NHWC", "HWIO", "NHWC")
    w1f, b1 = _fold_bn(w1, bn1, eps)
    w2f, b2 = _fold_bn(w2, bn2, eps)
    xb = x.astype(jnp.bfloat16)
    c1 = jax.lax.conv_general_dilated(xb, w1f.astype(jnp.bfloat16), (1, 1), "SAME",
                                      dimension_numbers=dn,
                                      preferred_element_type=jnp.float32)
    mid = jax.nn.relu(c1 + b1.reshape(1, 1, 1, -1))
    c2 = jax.lax.conv_general_dilated(mid.astype(jnp.bfloat16), w2f.astype(jnp.bfloat16),
                                      (1, 1), "SAME", dimension_numbers=dn,
                                      preferred_element_type=jnp.float32)
    out = c2 + b2.reshape(1, 1, 1, -1)
    if ws is not None:
        wsf, bs = _fold_bn(ws, bn_s, eps)
        sc = jnp.einsum("nhwc,cd->nhwd", xb, wsf.astype(jnp.bfloat16),
                        preferred_element_type=jnp.float32) + bs.reshape(1, 1, 1, -1)
    else:
        sc = xb.astype(jnp.float32)
    return jax.nn.relu(out + sc)


# ----------------------------------- demo -----------------------------------

if __name__ == "__main__":
    N, H, W = 4, 16, 16                 # N multiple of 2 -> both v7x cores get work
    in_planes, planes = 4, 8            # in_planes != planes -> projection shortcut

    key = jax.random.PRNGKey(0)
    ks = jax.random.split(key, 8)

    x = jax.random.normal(ks[0], (N, H, W, in_planes), jnp.float32)
    w1 = 0.1 * jax.random.normal(ks[1], (3, 3, in_planes, planes), jnp.float32)
    w2 = 0.1 * jax.random.normal(ks[2], (3, 3, planes, planes), jnp.float32)
    ws = 0.1 * jax.random.normal(ks[3], (in_planes, planes), jnp.float32)

    def bn_params(k, c):
        k1, k2, k3, k4 = jax.random.split(k, 4)
        gamma = 0.5 + jax.random.uniform(k1, (c,), jnp.float32)
        beta = 0.1 * jax.random.normal(k2, (c,), jnp.float32)
        mean = 0.1 * jax.random.normal(k3, (c,), jnp.float32)
        var = 0.5 + jax.random.uniform(k4, (c,), jnp.float32)
        return gamma, beta, mean, var

    bn1 = bn_params(ks[4], planes)
    bn2 = bn_params(ks[5], planes)
    bns = bn_params(ks[6], planes)

    out = block_forward(x, w1, bn1, w2, bn2, ws, bns)
    out = jax.block_until_ready(out)

    ref = _ref_forward(x, w1, bn1, w2, bn2, ws, bns)
    assert out.shape == (N, H, W, planes)
    err = jnp.max(jnp.abs(out - ref))
    assert jnp.allclose(out, ref, atol=2e-2, rtol=2e-2), f"max abs err {err}"

    print("KERNEL_OK")
</pallas_src>

<mosaic_0001>
module attributes {stable_mosaic.version = 11 : i64} {
  func.func @_block_kernel(%arg0: i32, %arg1: memref<1x16x64xbf16, #tpu.memory_space<vmem>>, %arg2: memref<64x512xbf16, #tpu.memory_space<vmem>>, %arg3: memref<1x128xf32, #tpu.memory_space<vmem>>, %arg4: memref<128x384xbf16, #tpu.memory_space<vmem>>, %arg5: memref<1x128xf32, #tpu.memory_space<vmem>>, %arg6: memref<1x128xf32, #tpu.memory_space<vmem>>, %arg7: memref<1x16x128xf32, #tpu.memory_space<vmem>>) attributes {dimension_semantics = [#tpu.dimension_semantics<parallel>], iteration_bounds = array<i64: 4>, scalar_prefetch = 0 : i64, scratch_operands = 0 : i64, tpu.core_type = #tpu.core_type<tc>, window_params = [{transform_indices = @transform_0, window_bounds = array<i64: 1, 16, 64>}, {pipeline_mode = #tpu.pipeline_mode<synchronous>, transform_indices = @transform_1, window_bounds = array<i64: 64, 512>}, {pipeline_mode = #tpu.pipeline_mode<synchronous>, transform_indices = @transform_2, window_bounds = array<i64: 1, 128>}, {pipeline_mode = #tpu.pipeline_mode<synchronous>, transform_indices = @transform_3, window_bounds = array<i64: 128, 384>}, {pipeline_mode = #tpu.pipeline_mode<synchronous>, transform_indices = @transform_4, window_bounds = array<i64: 1, 128>}, {pipeline_mode = #tpu.pipeline_mode<synchronous>, transform_indices = @transform_5, window_bounds = array<i64: 1, 128>}, {transform_indices = @transform_6, window_bounds = array<i64: 1, 16, 128>}]} {
    %c0 = arith.constant 0 : index
    %c0_0 = arith.constant 0 : index
    %c0_1 = arith.constant 0 : index
    %0 = vector.load %arg1[%c0, %c0_0, %c0_1] : memref<1x16x64xbf16, #tpu.memory_space<vmem>>, vector<1x16x64xbf16>
    %1 = vector.shape_cast %0 : vector<1x16x64xbf16> to vector<16x64xbf16>
    %c0_2 = arith.constant 0 : index
    %c0_3 = arith.constant 0 : index
    %2 = vector.load %arg2[%c0_2, %c0_3] : memref<64x512xbf16, #tpu.memory_space<vmem>>, vector<64x512xbf16>
    %cst = arith.constant dense<0.000000e+00> : vector<16x512xf32>
    %3 = tpu.matmul %1, %2, %cst {dimension_numbers = #tpu.dot_dimension_numbers<[1], [0], [0], [1], [0, 0, 1, 1], [], []>} : vector<16x64xbf16>, vector<64x512xbf16>, vector<16x512xf32> -> vector<16x512xf32>
    %4 = vector.extract_strided_slice %3 {offsets = [0, 0], sizes = [16, 128], strides = [1, 1]} : vector<16x512xf32> to vector<16x128xf32>
    %cst_4 = arith.constant 0.000000e+00 : f32
    %5 = vector.broadcast %cst_4 : f32 to vector<1x128xf32>
    %6 = vector.extract_strided_slice %4 {offsets = [0, 0], sizes = [15, 128], strides = [1, 1]} : vector<16x128xf32> to vector<15x128xf32>
    %7 = tpu.concatenate %5, %6 in 0 : vector<1x128xf32>, vector<15x128xf32> -> vector<16x128xf32>
    %8 = vector.extract_strided_slice %3 {offsets = [0, 128], sizes = [16, 128], strides = [1, 1]} : vector<16x512xf32> to vector<16x128xf32>
    %9 = arith.addf %7, %8 : vector<16x128xf32>
    %10 = vector.extract_strided_slice %3 {offsets = [0, 256], sizes = [16, 128], strides = [1, 1]} : vector<16x512xf32> to vector<16x128xf32>
    %cst_5 = arith.constant 0.000000e+00 : f32
    %11 = vector.broadcast %cst_5 : f32 to vector<1x128xf32>
    %12 = vector.extract_strided_slice %10 {offsets = [1, 0], sizes = [15, 128], strides = [1, 1]} : vector<16x128xf32> to vector<15x128xf32>
    %13 = tpu.concatenate %12, %11 in 0 : vector<15x128xf32>, vector<1x128xf32> -> vector<16x128xf32>
    %14 = arith.addf %9, %13 : vector<16x128xf32>
    %c0_6 = arith.constant 0 : index
    %c0_7 = arith.constant 0 : index
    %15 = vector.load %arg3[%c0_6, %c0_7] : memref<1x128xf32, #tpu.memory_space<vmem>>, vector<1x128xf32>
    %16 = vector.broadcast %15 : vector<1x128xf32> to vector<16x128xf32>
    %17 = arith.addf %14, %16 : vector<16x128xf32>
    %cst_8 = arith.constant 0.000000e+00 : f32
    %18 = vector.broadcast %cst_8 : f32 to vector<16x128xf32>
    %19 = arith.maximumf %17, %18 : vector<16x128xf32>
    %20 = arith.truncf %19 : vector<16x128xf32> to vector<16x128xbf16>
    %c0_9 = arith.constant 0 : index
    %c0_10 = arith.constant 0 : index
    %21 = vector.load %arg4[%c0_9, %c0_10] : memref<128x384xbf16, #tpu.memory_space<vmem>>, vector<128x384xbf16>
    %cst_11 = arith.constant dense<0.000000e+00> : vector<16x384xf32>
    %22 = tpu.matmul %20, %21, %cst_11 {dimension_numbers = #tpu.dot_dimension_numbers<[1], [0], [0], [1], [0, 0, 1, 1], [], []>} : vector<16x128xbf16>, vector<128x384xbf16>, vector<16x384xf32> -> vector<16x384xf32>
    %23 = vector.extract_strided_slice %22 {offsets = [0, 0], sizes = [16, 128], strides = [1, 1]} : vector<16x384xf32> to vector<16x128xf32>
    %cst_12 = arith.constant 0.000000e+00 : f32
    %24 = vector.broadcast %cst_12 : f32 to vector<1x128xf32>
    %25 = vector.extract_strided_slice %23 {offsets = [0, 0], sizes = [15, 128], strides = [1, 1]} : vector<16x128xf32> to vector<15x128xf32>
    %26 = tpu.concatenate %24, %25 in 0 : vector<1x128xf32>, vector<15x128xf32> -> vector<16x128xf32>
    %27 = vector.extract_strided_slice %22 {offsets = [0, 128], sizes = [16, 128], strides = [1, 1]} : vector<16x384xf32> to vector<16x128xf32>
    %28 = arith.addf %26, %27 : vector<16x128xf32>
    %29 = vector.extract_strided_slice %22 {offsets = [0, 256], sizes = [16, 128], strides = [1, 1]} : vector<16x384xf32> to vector<16x128xf32>
    %cst_13 = arith.constant 0.000000e+00 : f32
    %30 = vector.broadcast %cst_13 : f32 to vector<1x128xf32>
    %31 = vector.extract_strided_slice %29 {offsets = [1, 0], sizes = [15, 128], strides = [1, 1]} : vector<16x128xf32> to vector<15x128xf32>
    %32 = tpu.concatenate %31, %30 in 0 : vector<15x128xf32>, vector<1x128xf32> -> vector<16x128xf32>
    %33 = arith.addf %28, %32 : vector<16x128xf32>
    %c0_14 = arith.constant 0 : index
    %c0_15 = arith.constant 0 : index
    %34 = vector.load %arg5[%c0_14, %c0_15] : memref<1x128xf32, #tpu.memory_space<vmem>>, vector<1x128xf32>
    %35 = vector.broadcast %34 : vector<1x128xf32> to vector<16x128xf32>
    %36 = arith.addf %33, %35 : vector<16x128xf32>
    %37 = vector.extract_strided_slice %3 {offsets = [0, 384], sizes = [16, 128], strides = [1, 1]} : vector<16x512xf32> to vector<16x128xf32>
    %c0_16 = arith.constant 0 : index
    %c0_17 = arith.constant 0 : index
    %38 = vector.load %arg6[%c0_16, %c0_17] : memref<1x128xf32, #tpu.memory_space<vmem>>, vector<1x128xf32>
    %39 = vector.broadcast %38 : vector<1x128xf32> to vector<16x128xf32>
    %40 = arith.addf %37, %39 : vector<16x128xf32>
    %41 = arith.addf %36, %40 : vector<16x128xf32>
    %cst_18 = arith.constant 0.000000e+00 : f32
    %42 = vector.broadcast %cst_18 : f32 to vector<16x128xf32>
    %43 = arith.maximumf %41, %42 : vector<16x128xf32>
    %c0_19 = arith.constant 0 : index
    %c0_20 = arith.constant 0 : index
    %c0_21 = arith.constant 0 : index
    %44 = vector.load %arg7[%c0_19, %c0_20, %c0_21] : memref<1x16x128xf32, #tpu.memory_space<vmem>>, vector<1x16x128xf32>
    %45 = vector.shape_cast %44 : vector<1x16x128xf32> to vector<16x128xf32>
    %46 = vector.shape_cast %43 : vector<16x128xf32> to vector<1x16x128xf32>
    tpu.vector_store %arg7[%c0_19, %c0_20, %c0_21], %46 {strides = array<i32>} : memref<1x16x128xf32, #tpu.memory_space<vmem>>, vector<1x16x128xf32>,
    return
  }
  func.func @transform_0(%arg0: i32) -> (i32, i32, i32) {
    %c0_i32 = arith.constant 0 : i32
    %c0_i32_0 = arith.constant 0 : i32
    %c0_i32_1 = arith.constant 0 : i32
    return %arg0, %c0_i32, %c0_i32_0 : i32, i32, i32
  }
  func.func @transform_1(%arg0: i32) -> (i32, i32) {
    %c0_i32 = arith.constant 0 : i32
    %c0_i32_0 = arith.constant 0 : i32
    %c0_i32_1 = arith.constant 0 : i32
    return %c0_i32, %c0_i32_0 : i32, i32
  }
  func.func @transform_2(%arg0: i32) -> (i32, i32) {
    %c0_i32 = arith.constant 0 : i32
    %c0_i32_0 = arith.constant 0 : i32
    %c0_i32_1 = arith.constant 0 : i32
    return %c0_i32, %c0_i32_0 : i32, i32
  }
  func.func @transform_3(%arg0: i32) -> (i32, i32) {
    %c0_i32 = arith.constant 0 : i32
    %c0_i32_0 = arith.constant 0 : i32
    %c0_i32_1 = arith.constant 0 : i32
    return %c0_i32, %c0_i32_0 : i32, i32
  }
  func.func @transform_4(%arg0: i32) -> (i32, i32) {
    %c0_i32 = arith.constant 0 : i32
    %c0_i32_0 = arith.constant 0 : i32
    %c0_i32_1 = arith.constant 0 : i32
    return %c0_i32, %c0_i32_0 : i32, i32
  }
  func.func @transform_5(%arg0: i32) -> (i32, i32) {
    %c0_i32 = arith.constant 0 : i32
    %c0_i32_0 = arith.constant 0 : i32
    %c0_i32_1 = arith.constant 0 : i32
    return %c0_i32, %c0_i32_0 : i32, i32
  }
  func.func @transform_6(%arg0: i32) -> (i32, i32, i32) {
    %c0_i32 = arith.constant 0 : i32
    %c0_i32_0 = arith.constant 0 : i32
    %c0_i32_1 = arith.constant 0 : i32
    return %arg0, %c0_i32, %c0_i32_0 : i32, i32, i32
  }
}

</mosaic_0001>

<bundles_post_ra>
// kernel: tpu_custom_call.1
= control target key start
LH: loop header
LB: loop body
LE: loop exit
PB: predicated region body
PF: predicated region fallthrough
CT: control target
= control target key end

     0   :  { %11 = vsyncpa [#allocation3], 0  ;;  %s1558_s0 = inlined_call_operand.hbm [shape: bf16[4,16,64], index: 0, kind: input, shape index: {}]   ;;  %s1559_s1 = inlined_call_operand.hbm [shape: bf16[64,512], index: 1, kind: input, shape index: {}]   ;;  %s1560_s2 = inlined_call_operand.vmem [shape: f32[1,128], index: 2, kind: input, shape index: {}]   ;;  %s1561_s3 = inlined_call_operand.hbm [shape: bf16[128,384], index: 3, kind: input, shape index: {}]   ;;  %s1562_s4 = inlined_call_operand.vmem [shape: f32[1,128], index: 4, kind: input, shape index: {}]   ;;  %s1563_s5 = inlined_call_operand.vmem [shape: f32[1,128], index: 5, kind: input, shape index: {}]   ;;  %s1564_s6 = inlined_call_operand.hbm [shape: f32[4,16,128], index: 6, kind: output, shape index: {}]  }
   0x1   :  { %13 = vsyncpa [#allocation3 + $0x1], 0 }
   0x2   :  { %14 = vsyncpa [#allocation6], 0 }
   0x3   :  { %15 = vsyncpa [#allocation4], 0 }
   0x4   :  { %17 = vsyncpa [#allocation4 + $0x1], 0  ;;  %s1351_s21 = smov 0   ;;  %s1353_s22 = smov 0  }
   0x5   :  { %s1355_s23 = smov 0   ;;  %s1357_s24 = smov 0  }
   0x6 LB: > { %s1372_s25 = sadd.s32 4294967295, %s1299_s24   ;;  %s921_s26 = sadd.s32 4294967294, %s1299_s24   ;;  %s1299_s24 = sphi %s1357_s24, %s1585_s24   ;;  %s1295_s23 = sphi %s1355_s23, %s1584_s23   ;;  %s1291_s22 = sphi %s1353_s22, %s1583_s22   ;;  %s1287_s21 = sphi %s1351_s21, %s1582_s21  }
   0x7   : > { %p43_p0 = scmp.ne.s32.totalorder %s1291_s22, %s1287_s21  ;;  %p1565_p1 = scmp.eq.s32.totalorder %s1372_s25, 0 }
   0x8   : > { %p178_p3 = scmp.eq.s32.totalorder %s921_s26, 3  ;;  %p922_p5 = scmp.ge.s32.totalorder %s1299_s24, 1 }
   0x9   : > { %p1381_p4 = por %p1565_p1, %p43_p0  ;;  %p185_p7 = scmp.lt.s32.totalorder %s1299_s24, 5 }
   0xa   : > { %p1386_p6 = por %p178_p3, %p43_p0  ;;  %s1301_s30 = smov [#allocation5]  }
   0xb   : > { %s1569_s27 = scalar_select %p1381_p4, 1, 0 }
   0xc   : > { %s1570_s28 = scalar_select %p1386_p6, 1, 0 }
   0xd   : > { %p1391_p8 = pnand %p922_p5, %p185_p7  ;;  %s197_s7 = sshll.u32 %s1301_s30, 4  ;;  %s198_s7 = int_to_ptr.vmem [resolvable:$true] %s197_s7 }
   0xe   : > { %s1302_s9 = smov [#allocation7]   ;;  %s1162_s11 = scalar_lea.vmem %s198_s7, 2048 }
   0xf   : > { %s1571_s29 = scalar_select %p1391_p8, 1, 0 }
  0x10   : > { %p1028_p9 = pneg %p1391_p8  ;;  %s213_s10 = sshll.u32 %s1302_s9, 4  ;;  %s214_s10 = int_to_ptr.vmem [resolvable:$true] %s213_s10 }
  0x11   : > { %p1163_p12 = scmp.ne.s32.totalorder %s198_s7, %s1162_s11  ;;  %p1170_p3 = scmp.lt.s32.totalorder %s198_s7, %s198_s7 }
  0x12   : > { %p1399_p10 = pnand %p1028_p9, %p1565_p1  ;;  %p1171_p5 = scmp.lt.s32.totalorder %s1162_s11, %s1162_s11 }
  0x14   : > { %p1153_p11 = pneg %p1399_p10  ;;  %p1172_p7 = por %p1171_p5, %p1170_p3 }
  0x16   : > { %p1165_p13 = pnand %p1163_p12, %p1153_p11 }
  0x18   : > { %p1166_p0 = pneg %p1165_p13 }
  0x1a   : > { %p1173_p9 = pnand %p1172_p7, %p1166_p0 }
  0x1c   : > { %1176 = shalt.err (!%p1173_p9)
}
  0x1d   : > { %s1303_s12 = smov 256   ;;  %s1304_s13 = smov 16  }
  0x1e   : > { %1031 = dma.hbm_to_vmem [thread:$0]  (!%p1399_p10), %s1559_s1, 2048, %s198_s7, [#allocation6], %s1303_s12, %s1303_s12, %s1304_s13  }
  0x1f   : > { %s1188_s16 = scalar_lea.vmem %s214_s10, 3072  ;;  %p1196_p2 = scmp.lt.s32.totalorder %s214_s10, %s214_s10 }
  0x20   : > { %p1189_p1 = scmp.ne.s32.totalorder %s214_s10, %s1188_s16  ;;  %p1197_p6 = scmp.lt.s32.totalorder %s1188_s16, %s1188_s16 }
  0x22   : > { %p1191_p12 = pnand %p1189_p1, %p1153_p11  ;;  %p1198_p3 = por %p1197_p6, %p1196_p2 }
  0x24   : > { %p1192_p13 = pneg %p1191_p12 }
  0x26   : > { %p1199_p0 = pnand %p1198_p3, %p1192_p13 }
  0x28   : > { %1202 = shalt.err (!%p1199_p0)
}
  0x29   : > { %s1305_s17 = smov 192   ;;  %s1306_s18 = smov 12  }
  0x2a   : > { %1034 = dma.hbm_to_vmem [thread:$0]  (!%p1399_p10), %s1561_s3, 3072, %s214_s10, [#allocation6], %s1305_s17, %s1305_s17, %s1306_s18  }
  0x2b   : > { %s1422_s26 = sadd.s32 1, %s1299_s24   ;;  %s30_s7 = sadd.s32 1, %s1295_s23 }
  0x2c   : > { %s27_s30 = ssub.s32 %s1299_s24, %s1422_s26  ;;  %p37_p2 = scmp.ne.s32.totalorder %s1295_s23, %s1291_s22 }
  0x2d   : > { %p28_p1 = scmp.eq.s32.totalorder %s27_s30, 0  ;;  %p38_p6 = scmp.eq.s32.totalorder %s1299_s24, 0 }
  0x2e   : > { %p1573_p5 = scmp.eq.s32.totalorder %s1372_s25, 3  ;;  %p1045_p9 = scmp.lt.s32.totalorder %s1299_s24, 4 }
  0x2f   : > { %s1431_s9 = scalar_select %p28_p1, %s1295_s23, %s30_s7  }
  0x30   : > { %p39_p11 = por %p38_p6, %p37_p2  ;;  %p1435_p7 = por %p1573_p5, %p37_p2 }
  0x31   : > { %s233_s8 = sand.u32 1, %s1295_s23   ;;  %s985_s10 = sshll.u32 %s1299_s24, 7 }
  0x32   : > { %s1574_s11 = scalar_select %p1435_p7, 1, 0 }
  0x33   : > { %s926_s12 = sshll.u32 %s233_s8, 3  ;;  %s1445_s15 = scalar_lea.hbm %s1558_s0, %s985_s10 }
  0x34   : > { %s237_s16 = scalar_lea.vmem [#allocation2], %s926_s12  ;;  %p1449_p10 = pnand %p1045_p9, %p39_p11 }
  0x35   : > { %s244_s17 = sshll.u32 %s237_s16, 4  ;;  %s1453_s19 = scalar_lea.sflag [#allocation3], %s233_s8  ;;  %s1447_s17 = int_to_ptr.vmem [resolvable:$true] %s244_s17 }
  0x36   : > { %s1203_s20 = scalar_lea.hbm %s1445_s15, 128  ;;  %p1205_p13 = pneg %p1449_p10 }
  0x37   : > { %p1204_p12 = scmp.ne.s32.totalorder %s1445_s15, %s1203_s20  ;;  %s1208_s12 = scalar_lea.hbm %s1558_s0, 512 }
  0x38   : > { %p1209_p1 = scmp.lt.s32.totalorder %s1445_s15, %s1558_s0  ;;  %p1210_p2 = scmp.lt.s32.totalorder %s1208_s12, %s1203_s20 }
  0x39   : > { %p1206_p3 = pnand %p1205_p13, %p1204_p12 }
  0x3a   : > { %p1211_p6 = por %p1210_p2, %p1209_p1 }
  0x3b   : > { %p1207_p0 = pneg %p1206_p3 }
  0x3d   : > { %p1212_p11 = pnand %p1211_p6, %p1207_p0 }
  0x3f   : > { %1215 = shalt.err (!%p1212_p11)
}
  0x40   : > { %s1216_s8 = scalar_lea.vmem %s1447_s17, 128  ;;  %s1307_s14 = smov [#allocation2]  }
  0x41   : > { %p1217_p5 = scmp.ne.s32.totalorder %s1447_s17, %s1216_s8  ;;  %s1221_s16 = sshll.u32 %s1307_s14, 4  ;;  %s1222_s16 = int_to_ptr.vmem [resolvable:$false] %s1221_s16 }
  0x42   : > { %s1223_s30 = scalar_lea.vmem %s1222_s16, 256  ;;  %p1224_p3 = scmp.lt.s32.totalorder %s1447_s17, %s1222_s16 }
  0x43   : > { %p1219_p9 = pnand %p1217_p5, %p1205_p13  ;;  %p1225_p7 = scmp.lt.s32.totalorder %s1223_s30, %s1216_s8 }
  0x45   : > { %p1220_p12 = pneg %p1219_p9  ;;  %p1226_p4 = por %p1225_p7, %p1224_p3 }
  0x47   : > { %p1227_p8 = pnand %p1226_p4, %p1220_p12 }
  0x49   : > { %1230 = shalt.err (!%p1227_p8)
}
  0x4a   : > { %s1308_s20 = smov 64   ;;  %s1309_s7 = smov 4  }
  0x4b   : > { %1038 = dma.hbm_to_vmem [thread:$0]  (!%p1449_p10), %s1445_s15, 128, %s1447_s17, %s1453_s19, %s1308_s20, %s1308_s20, %s1309_s7  }
  0x4c   : > { %p1576_p13 = scmp.ne.s32.totalorder %s1571_s29, 0 }
  0x4d   : > { %s1477_s12 = sand.u32 (!%p1576_p13), 1, %s1291_s22   ;;  %p1577_p4 = scmp.ne.s32.totalorder (!%p1576_p13), %s1569_s27, 0 }
  0x4e   : > { %256 = sbr.rel (%p1576_p13) target bundleno = 539 (0x21b), region = 44  ;;  %s930_s10 = sshll.u32 (!%p1576_p13), %s1477_s12, 3 }
  0x4f   : > { %s259_s13 = scalar_lea.sflag (!%p1576_p13), [#allocation3], %s1477_s12  ;;  %s1481_s8 = scalar_lea.vmem (!%p1576_p13), [#allocation2], %s930_s10 }
  0x53   : > { %1274 = dma.done.wait (%p1577_p4), %s259_s13, 128  }
  0x54   : > { %1276 = vsyncadd (%p1577_p4), %s259_s13, 4294967168  ;;  %p1578_p8 = scmp.eq.s32.totalorder %s1372_s25, 0 }
  0x56   : > { %1278 = dma.done.wait (%p1578_p8), [#allocation6], 5120   ;;  %p1579_p7 = pmov %p1578_p8 }
  0x57   : > { %v1310_v0 = vmov 0   ;;  %v1094_v1 = vld [vmem:[#allocation5 + $0x64] ss:$16 sps:$4 sm:$0xff]   ;;  %v1096_v2 = vld [vmem:[#allocation5 + $0x6c] ss:$16 sps:$4 sm:$0xff]   ;;  %vm403_vm0 = vcmask 523264  }
  0x58   : > { %1280 = vsyncadd (%p1579_p7), [#allocation6], 4294962176  ;;  %439 = vmatprep.mubr.bf16.mxu0 %v1310_v0  ;;  %482 = vmatprep.mubr.bf16.mxu1 %v1310_v0  ;;  %v1098_v3 = vld [vmem:[#allocation5 + $0x60] ss:$16 sps:$4 sm:$0xff]   ;;  %v1099_v4 = vld [vmem:[#allocation5 + $0x68] ss:$16 sps:$4 sm:$0xff]  }
  0x59   : > { %415 = vmatprep.subr.bf16.mxu0 %v1094_v1  ;;  %458 = vmatprep.subr.bf16.mxu1 %v1096_v2  ;;  %v1100_v5 = vld [vmem:[#allocation5 + $0x44] ss:$16 sps:$4 sm:$0xff]   ;;  %v1102_v6 = vld [vmem:[#allocation5 + $0x4c] ss:$16 sps:$4 sm:$0xff]   ;;  %v1104_v7 = vld [vmem:[#allocation5 + $0x40] ss:$16 sps:$4 sm:$0xff]  }
  0x5a   : > { %416 = vmatpush1.bf16.msra.mxu0 %v1098_v3  ;;  %459 = vmatpush1.bf16.msra.mxu1 %v1099_v4  ;;  %v1105_v8 = vld [vmem:[#allocation5 + $0x48] ss:$16 sps:$4 sm:$0xff]   ;;  %v1106_v9 = vld [vmem:[#allocation5 + $0x24] ss:$16 sps:$4 sm:$0xff]   ;;  %v1108_v10 = vld [vmem:[#allocation5 + $0x2c] ss:$16 sps:$4 sm:$0xff]  }
  0x5b   : > { %417 = vmatprep.subr.bf16.mxu0 %v1100_v5  ;;  %460 = vmatprep.subr.bf16.mxu1 %v1102_v6  ;;  %v1110_v11 = vld [vmem:[#allocation5 + $0x20] ss:$16 sps:$4 sm:$0xff]   ;;  %v1111_v12 = vld [vmem:[#allocation5 + $0x28] ss:$16 sps:$4 sm:$0xff]   ;;  %v1112_v13 = vld [vmem:[#allocation5 + $0x4] ss:$16 sps:$4 sm:$0xff]  }
  0x5c   : > { %v1114_v14 = vld [vmem:[#allocation5 + $0xc] ss:$16 sps:$4 sm:$0xff]   ;;  %v1116_v15 = vld [vmem:[#allocation5] ss:$16 sps:$4 sm:$0xff]   ;;  %v1117_v16 = vld [vmem:[#allocation5 + $0x8] ss:$16 sps:$4 sm:$0xff]  }
  0x5d   : > { %v1121_v17 = vld [vmem:[#allocation7 + $0xac] ss:$12 sps:$4 sm:$0xff]   ;;  %v1119_v19 = vld [vmem:[#allocation7 + $0xa8] ss:$12 sps:$4 sm:$0xff]   ;;  %v1122_v20 = vld [vmem:[#allocation7 + $0xb0] ss:$12 sps:$4 sm:$0xff]  }
  0x5e   : > { %418 = vmatpush1.bf16.msra.mxu0 %v1104_v7  ;;  %461 = vmatpush1.bf16.msra.mxu1 %v1105_v8  ;;  %v1118_v18 = vld [vmem:[%s1481_s8] sm:$0xff]   ;;  %v1311_v21 = vmov 0.0   ;;  %v1130_v27 = vld [vmem:[#allocation7 + $0x80] ss:$12 sps:$4 sm:$0xff]   ;;  %vm1312_vm1 = vmmov 0   ;;  %vm495_vm2 = vcmask 1040384  }
  0x5f   : > { %419 = vmatprep.subr.bf16.mxu0 %v1106_v9  ;;  %462 = vmatprep.subr.bf16.mxu1 %v1108_v10  ;;  %v1125_v22 = vld [vmem:[#allocation7 + $0x94] ss:$12 sps:$4 sm:$0xff]   ;;  %v1123_v23 = vld [vmem:[#allocation7 + $0x90] ss:$12 sps:$4 sm:$0xff]   ;;  %v1126_v24 = vld [vmem:[#allocation7 + $0x98] ss:$12 sps:$4 sm:$0xff]  }
  0x60   : > { %v1129_v25 = vld [vmem:[#allocation7 + $0x7c] ss:$12 sps:$4 sm:$0xff]   ;;  %v1127_v26 = vld [vmem:[#allocation7 + $0x78] ss:$12 sps:$4 sm:$0xff]   ;;  %v1131_v29 = vld [vmem:[#allocation7 + $0x60] ss:$12 sps:$4 sm:$0xff]  }
  0x61   : > { %v1133_v28 = vld [vmem:[#allocation7 + $0x64] ss:$12 sps:$4 sm:$0xff]   ;;  %v1134_v30 = vld [vmem:[#allocation7 + $0x68] ss:$12 sps:$4 sm:$0xff]   ;;  %v1137_v31 = vld [vmem:[#allocation7 + $0x4c] ss:$12 sps:$4 sm:$0xff]  }
  0x62   : > { %420 = vmatpush1.bf16.msra.mxu0 %v1110_v11  ;;  %463 = vmatpush1.bf16.msra.mxu1 %v1111_v12  ;;  %v1135_v32 = vld [vmem:[#allocation7 + $0x48] ss:$12 sps:$4 sm:$0xff]   ;;  %v1138_v33 = vld [vmem:[#allocation7 + $0x50] ss:$12 sps:$4 sm:$0xff]   ;;  %v1142_v36 = vld [vmem:[#allocation7 + $0x38] ss:$12 sps:$4 sm:$0xff]  }
  0x63   : > { %421 = vmatprep.subr.bf16.mxu0 %v1112_v13  ;;  %464 = vmatprep.subr.bf16.mxu1 %v1114_v14  ;;  %v1141_v34 = vld [vmem:[#allocation7 + $0x34] ss:$12 sps:$4 sm:$0xff]   ;;  %v1139_v35 = vld [vmem:[#allocation7 + $0x30] ss:$12 sps:$4 sm:$0xff]   ;;  %v1143_v38 = vld [vmem:[#allocation7 + $0x18] ss:$12 sps:$4 sm:$0xff]  }
  0x64   : > { %v1145_v37 = vld [vmem:[#allocation7 + $0x1c] ss:$12 sps:$4 sm:$0xff]   ;;  %v1146_v39 = vld [vmem:[#allocation7 + $0x20] ss:$12 sps:$4 sm:$0xff]   ;;  %v1149_v40 = vld [vmem:[#allocation7 + $0x4] ss:$12 sps:$4 sm:$0xff]  }
  0x65   : > { %v1147_v41 = vld [vmem:[#allocation7] ss:$12 sps:$4 sm:$0xff]   ;;  %v1150_v42 = vld [vmem:[#allocation7 + $0x8] ss:$12 sps:$4 sm:$0xff]   ;;  %vm506_vm3 = vcmask 1046528   ;;  %s933_s15 = sshll.u32 %s1477_s12, 4 }
  0x66   : > { %422 = vmatpush1.bf16.msra.mxu0 %v1116_v15  ;;  %465 = vmatpush1.bf16.msra.mxu1 %v1117_v16  ;;  %v953_v58 = vld [vmem:[%s1560_s2] ss:$0 sm:$0xff]  ;;  %s986_s16 = sshll.u32 %s1372_s25, 8  ;;  %s298_s30 = scalar_lea.vmem [#allocation8], %s933_s15 }
  0x67   : > { %687 = vmatprep.subr.bf16.mxu0 %v1121_v17  ;;  %996 = vmatprep.subr.bf16.mxu1 %v1311_v21  ;;  %s829_s20 = sshll.u32 %s298_s30, 4  ;;  %s1514_s13 = scalar_lea.hbm %s1564_s6, %s986_s16  ;;  %s1516_s20 = int_to_ptr.vmem [resolvable:$true] %s829_s20 }
  0x68   : > { %s816_s8 = scalar_lea.sflag [#allocation4], %s1477_s12  ;;  %s1231_s27 = scalar_lea.vmem %s1516_s20, 256 }
  0x69   : > { %951 = vmatmul.mubr.msk.bf16.vlgmr.msra.gmra.mxu0 %vm403_vm0, %v1118_v18  ;;  %952 = vmatmul.mubr.msk.bf16.vlgmr.msra.gmra.mxu1 %vm403_vm0, %v1118_v18  ;;  %p1232_p10 = scmp.ne.s32.totalorder %s1516_s20, %s1231_s27  ;;  %p1580_p0 = scmp.ne.s32.totalorder %s1574_s11, 0 }
  0x6a   : > { %688 = vmatpush1.bf16.msra.mxu0 %v1119_v19  ;;  %997 = vmatpush3.bf16.msra.mxu1 %v1122_v20  ;;  %v979_v19 = vld [vmem:[%s1563_s5] ss:$0 sm:$0xff]  ;;  %s1313_s25 = smov [#allocation8]  }
  0x6b   : > { %689 = vmatprep.subr.bf16.mxu0 %v1125_v22  ;;  %998 = vmatprep.subr.bf16.mxu1 %v1311_v21  ;;  %v978_v22 = vld [vmem:[%s1562_s4] ss:$0 sm:$0xff]  ;;  %p1233_p1 = pnand %p1232_p10, %p1580_p0  ;;  %s1235_s29 = sshll.u32 %s1313_s25, 4  ;;  %s1236_s29 = int_to_ptr.vmem [resolvable:$false] %s1235_s29 }
  0x6c   : > { %719 = vmatprep.mubr.bf16.mxu0 %v1310_v0  ;;  %1012 = vmatprep.mubr.msk.bf16.mxu1 %vm1312_vm1, %v1311_v21  ;;  %s1237_s15 = scalar_lea.vmem %s1236_s29, 512  ;;  %p1238_p6 = scmp.lt.s32.totalorder %s1516_s20, %s1236_s29 }
  0x6d   : > { %p1234_p2 = pneg %p1233_p1  ;;  %p1239_p11 = scmp.lt.s32.totalorder %s1237_s15, %s1231_s27 }
  0x6e   : > { %690 = vmatpush1.bf16.msra.mxu0 %v1123_v23  ;;  %999 = vmatpush3.bf16.msra.mxu1 %v1126_v24 }
  0x6f   : > { %691 = vmatprep.subr.bf16.mxu0 %v1129_v25  ;;  %1000 = vmatprep.subr.bf16.mxu1 %v1311_v21  ;;  %p1240_p5 = por %p1239_p11, %p1238_p6 }
  0x71   : > { %p1241_p9 = pnand %p1240_p5, %p1234_p2 }
  0x72   : > { %692 = vmatpush1.bf16.msra.mxu0 %v1127_v26  ;;  %1001 = vmatpush3.bf16.msra.mxu1 %v1130_v27 }
  0x73   : > { %693 = vmatprep.subr.bf16.mxu0 %v1133_v28  ;;  %1002 = vmatprep.subr.bf16.mxu1 %v1311_v21 }
  0x76   : > { %694 = vmatpush1.bf16.msra.mxu0 %v1131_v29  ;;  %1003 = vmatpush3.bf16.msra.mxu1 %v1134_v30 }
  0x77   : > { %1004 = vmatprep.subr.bf16.mxu1 %v1311_v21  ;;  %695 = vmatprep.subr.bf16.mxu0 %v1137_v31 }
  0x7a   : > { %696 = vmatpush1.bf16.msra.mxu0 %v1135_v32  ;;  %1005 = vmatpush3.bf16.msra.mxu1 %v1138_v33 }
  0x7b   : > { %1006 = vmatprep.subr.bf16.mxu1 %v1311_v21  ;;  %697 = vmatprep.subr.bf16.mxu0 %v1141_v34 }
  0x7e   : > { %698 = vmatpush1.bf16.msra.mxu0 %v1139_v35  ;;  %1007 = vmatpush3.bf16.msra.mxu1 %v1142_v36 }
  0x7f   : > { %1008 = vmatprep.subr.bf16.mxu1 %v1311_v21  ;;  %699 = vmatprep.subr.bf16.mxu0 %v1145_v37 }
  0x82   : > { %700 = vmatpush1.bf16.msra.mxu0 %v1143_v38  ;;  %1009 = vmatpush3.bf16.msra.mxu1 %v1146_v39 }
  0x83   : > { %1010 = vmatprep.subr.bf16.mxu1 %v1311_v21  ;;  %701 = vmatprep.subr.bf16.mxu0 %v1149_v40 }
  0x86   : > { %702 = vmatpush1.bf16.msra.mxu0 %v1147_v41  ;;  %1011 = vmatpush3.bf16.msra.mxu1 %v1150_v42 }
 0x129   : > { %v441_v43 = vpop.f32.mrf.mxu0  ;;  %v484_v44 = vpop.f32.mrf.mxu1 }
 0x12a   : > { %v496_v45 = vrot.slane %v441_v43, 7  ;;  %v507_v51 = vrot.slane %v484_v44, 1 }
 0x12b   : > { %v443_v46 = vpop.f32.mrf.mxu0  ;;  %v486_v47 = vpop.f32.mrf.mxu1 }
 0x12c   : > { %v501_v48 = vsel %vm495_vm2, 0.0, %v496_v45  ;;  %v807_v26 = vadd.f32 %v979_v19, %v486_v47 }
 0x12d   : > { %v445_v49 = vpop.f32.mrf.mxu0  ;;  %v488_v50 = vpop.f32.mrf.mxu1  ;;  %v502_v54 = vadd.f32 %v501_v48, %v443_v46 }
 0x12e   : > { %v497_v52 = vrot.slane %v445_v49, 7  ;;  %v508_v53 = vrot.slane %v488_v50, 1 }
 0x12f   : > { %v447_v55 = vpop.f32.mrf.mxu0  ;;  %v490_v4 = vpop.f32.mrf.mxu1 }
 0x130   : > { %v509_v56 = vsel %vm506_vm3, %v507_v51, %v508_v53  ;;  %v498_v57 = vsel %vm495_vm2, %v496_v45, %v497_v52  ;;  %v512_v61 = vsel %vm506_vm3, %v508_v53, 0.0  ;;  %v808_v29 = vadd.f32 %v979_v19, %v490_v4 }
 0x131   : > { %v513_v59 = vadd.f32 %v509_v56, %v502_v54  ;;  %v503_v60 = vadd.f32 %v498_v57, %v447_v55 }
 0x133   : > { %v514_v62 = vadd.f32 %v512_v61, %v503_v60  ;;  %v522_v63 = vadd.f32 %v953_v58, %v513_v59 }
 0x135   : > { %v523_v0 = vadd.f32 %v953_v58, %v514_v62  ;;  %v524_v1 = vmax.f32 %v522_v63, 0.0 }
 0x137   : > { %v525_v2 = vmax.f32 %v523_v0, 0.0 }
 0x139   : > { %v526_v3 = vpack.c.bf16 %v525_v2, %v524_v1 }
 0x13b   : > { %720 = vmatmul.mubr.bf16.vlgmr.msra.gmra.mxu0 %v526_v3  ;;  %1013 = vmatmul.mubr.bf16.vlgmr.msra.gmra.mxu1 %v526_v3 }
 0x1fb   : > { %v721_v5 = vpop.f32.mrf.mxu0  ;;  %v764_v6 = vpop.f32.mrf.mxu1 }
 0x1fc   : > { %v773_v7 = vrot.slane %v721_v5, 7  ;;  %v783_v13 = vrot.slane %v764_v6, 1 }
 0x1fd   : > { %v723_v8 = vpop.f32.mrf.mxu0  ;;  %v1014_v9 = vpop.f32.mrf.mxu1 }
 0x1fe   : > { %v778_v10 = vsel %vm495_vm2, 0.0, %v773_v7 }
 0x1ff   : > { %v725_v11 = vpop.f32.mrf.mxu0  ;;  %v767_v12 = vpop.f32.mrf.mxu1  ;;  %v779_v16 = vadd.f32 %v778_v10, %v723_v8 }
 0x200   : > { %v774_v14 = vrot.slane %v725_v11, 7  ;;  %v784_v15 = vrot.slane %v767_v12, 1 }
 0x201   : > { %v727_v17 = vpop.f32.mrf.mxu0  ;;  %v1015_v18 = vpop.f32.mrf.mxu1 }
 0x202   : > { %v785_v20 = vsel %vm506_vm3, %v783_v13, %v784_v15  ;;  %v775_v21 = vsel %vm495_vm2, %v773_v7, %v774_v14  ;;  %v788_v25 = vsel %vm506_vm3, %v784_v15, 0.0 }
 0x203   : > { %v789_v23 = vadd.f32 %v785_v20, %v779_v16  ;;  %v780_v24 = vadd.f32 %v775_v21, %v727_v17 }
 0x205   : > { %v790_v27 = vadd.f32 %v788_v25, %v780_v24  ;;  %v798_v28 = vadd.f32 %v978_v22, %v789_v23 }
 0x207   : > { %v799_v30 = vadd.f32 %v978_v22, %v790_v27  ;;  %v809_v31 = vadd.f32 %v807_v26, %v798_v28 }
 0x209   : > { %v810_v32 = vadd.f32 %v808_v29, %v799_v30  ;;  %v811_v33 = vmax.f32 %v809_v31, 0.0 }
 0x20b   : > { %v812_v34 = vmax.f32 %v810_v32, 0.0  ;;  %813 = vst [vmem:[%s298_s30] sm:$0xff] %v811_v33 }
 0x20d   : > { %814 = vst [vmem:[%s298_s30 + $0x8] sm:$0xff] %v812_v34 }
 0x20e   : > { %1244 = shalt.err (!%p1241_p9)
}
 0x20f   : > { %s1245_s17 = scalar_lea.hbm %s1514_s13, 256  ;;  %s1249_s14 = scalar_lea.hbm %s1564_s6, 1024 }
 0x210   : > { %p1246_p12 = scmp.ne.s32.totalorder %s1514_s13, %s1245_s17  ;;  %p1250_p4 = scmp.lt.s32.totalorder %s1514_s13, %s1564_s6 }
 0x211   : > { %p1251_p8 = scmp.lt.s32.totalorder %s1249_s14, %s1245_s17 }
 0x212   : > { %p1247_p3 = pnand %p1246_p12, %p1580_p0 }
 0x213   : > { %p1252_p7 = por %p1251_p8, %p1250_p4 }
 0x214   : > { %p1248_p13 = pneg %p1247_p3 }
 0x216   : > { %p1253_p10 = pnand %p1252_p7, %p1248_p13 }
 0x218   : > { %1256 = shalt.err (!%p1253_p10)
}
 0x219   : > { %s1314_s7 = smov 128   ;;  %s1315_s10 = smov 8  }
 0x21a   : > { %1026 = dma.vmem_to_hbm [thread:$0]  (%p1580_p0), %s1516_s20, 256, %s1514_s13, %s816_s8, %s1314_s7, %s1314_s7, %s1315_s10  }
 0x21b PF: > { %p1048_p1 = scmp.ge.s32.totalorder %s1299_s24, 2  ;;  %s844_s27 = sand.u32 1, %s1287_s21  }
 0x21c   : > { %p1581_p2 = scmp.ne.s32.totalorder %s1570_s28, 0  ;;  %s845_s25 = scalar_lea.sflag [#allocation4], %s844_s27 }
 0x21e   : > { %p1040_p6 = pnand %p1048_p1, %p1581_p2 }
 0x220   : > { %p1041_p11 = pneg %p1040_p6 }
 0x222   : > { %1282 = dma.done.wait (%p1041_p11), %s845_s25, 256  }
 0x223   : > { %1284 = vsyncadd (%p1041_p11), %s845_s25, 4294967040  ;;  %p20_p5 = scmp.ge.s32.totalorder %s1422_s26, 6   ;;  %s1582_s21 = smov %s1291_s22 }
 0x224   : > { %s1583_s22 = smov %s1295_s23  ;;  %s1584_s23 = smov %s1431_s9 }
 0x225   : > { %s1585_s24 = smov %s1422_s26  ;;  %22 = sbr.rel (!%p20_p5) target bundleno = 6 (0x6), region = 97 }
 0x22a   :  { %850 = vsyncpa [#allocation3], 1 }
 0x22b   :  { %852 = vsyncpa [#allocation3 + $0x1], 1 }
 0x22c   :  { %853 = vsyncpa [#allocation6], 1 }
 0x22d   :  { %854 = vsyncpa [#allocation4], 1 }
 0x22e   :  { %856 = vsyncpa [#allocation4 + $0x1], 1 }

</bundles_post_ra>
